<compile_context>
chip_gen: v5e
topology: v5e:2x2
jax: 0.10.0
libtpu: 0.0.40
codegen_flags: <defaults>
</compile_context>

<pallas_src>
import functools

import jax
import jax.numpy as jnp
from jax.experimental import pallas as pl
from jax.experimental.pallas import tpu as pltpu


def _bilinear_matrix(in_size: int, scale: float) -> jnp.ndarray:
    """Row-stochastic (out_size, in_size) matrix reproducing PyTorch
    F.interpolate(mode='bilinear', align_corners=False) along one axis.
    Uses the scale_factor path (src = (dst+0.5)/scale - 0.5); exact for
    integer scale factors such as the module's scale_factor=2."""
    out_size = int(in_size * scale)
    o = jnp.arange(out_size, dtype=jnp.float32)
    src = (o + 0.5) / jnp.float32(scale) - 0.5
    src = jnp.maximum(src, 0.0)
    i0 = jnp.floor(src).astype(jnp.int32)
    i0 = jnp.minimum(i0, in_size - 1)
    i1 = jnp.minimum(i0 + 1, in_size - 1)
    lam = src - i0.astype(jnp.float32)
    rows = jnp.arange(out_size)
    w = jnp.zeros((out_size, in_size), dtype=jnp.float32)
    w = w.at[rows, i0].add(1.0 - lam)
    w = w.at[rows, i1].add(lam)
    return w


def _interp_kernel(wy_ref, wxt_ref, x_ref, o_ref):
    # wy_ref: (Ho, Hi)   wxt_ref: (Wi, Wo)
    # x_ref : (TC, Hi, Wi)   o_ref: (TC, Ho, Wo)
    tc, hi, wi = x_ref.shape
    ho, wo = o_ref.shape[1], o_ref.shape[2]

    x = x_ref[...]                                          # (TC, Hi, Wi)

    # H-axis contraction, batched over the TC planes (narrow Wi columns, so
    # this is the cheap half of the separable resample).
    wy_b = jnp.broadcast_to(wy_ref[...], (tc, ho, hi))      # (TC, Ho, Hi)
    u = jnp.einsum("boh,bhw->bow", wy_b, x,
                   preferred_element_type=jnp.float32)      # (TC, Ho, Wi) f32

    # W-axis contraction as one large MXU matmul: fold (TC, Ho) into M.
    # Wx comes in pre-transposed, so no in-kernel transpose.
    u2 = u.reshape(tc * ho, wi).astype(wxt_ref.dtype)       # (TC*Ho, Wi)
    out = jnp.dot(u2, wxt_ref[...],
                  preferred_element_type=jnp.float32)       # (TC*Ho, Wo)

    o_ref[...] = out.reshape(tc, ho, wo).astype(o_ref.dtype)


def _pick_block_planes(nc, hi, wi, ho, wo, itemsize):
    """Planes per grid step, sized against a conservative VMEM budget."""
    # Double-buffered input + output blocks.
    per_plane = 2 * (hi * wi + ho * wo) * itemsize
    # f32 intermediates (H-contracted tensor, matmul result) + broadcast Wy.
    per_plane += (ho * wi + ho * wo) * 4 + ho * hi * itemsize
    budget = 24 * 1024 * 1024          # fits v7x (64 MiB) with headroom
    tc = max(1, budget // per_plane)
    tc = int(min(tc, 256, nc))
    if tc >= 8:
        tc = (tc // 8) * 8
    if nc >= 16:
        # Keep at least 2 grid steps so the plane axis can split across the
        # two TensorCores on megacore / v7x parts.
        half = ((nc + 1) // 2 + 7) // 8 * 8
        tc = min(tc, half)
    return max(1, tc)


@functools.partial(jax.jit, static_argnames=("scale_factor",))
def interpolate_bilinear(x: jnp.ndarray, scale_factor: float = 2.0) -> jnp.ndarray:
    """x: (N, C, H, W) -> (N, C, H*s, W*s), bilinear, align_corners=False."""
    n, c, hi, wi = x.shape
    ho = int(hi * scale_factor)
    wo = int(wi * scale_factor)
    nc = n * c

    # Interpolation matrices built once in plain JAX.  Wx is pre-transposed
    # here (hoisted out of the kernel); both are fed to the MXU in x.dtype
    # with f32 accumulation inside the kernel.
    wy = _bilinear_matrix(hi, scale_factor).astype(x.dtype)        # (Ho, Hi)
    wxt = _bilinear_matrix(wi, scale_factor).T.astype(x.dtype)     # (Wi, Wo)

    x_flat = x.reshape(nc, hi, wi)
    tc = _pick_block_planes(nc, hi, wi, ho, wo, x.dtype.itemsize)
    grid = (pl.cdiv(nc, tc),)

    out_flat = pl.pallas_call(
        _interp_kernel,
        out_shape=jax.ShapeDtypeStruct((nc, ho, wo), x.dtype),
        grid_spec=pltpu.PrefetchScalarGridSpec(
            num_scalar_prefetch=0,
            grid=grid,
            in_specs=[
                pl.BlockSpec((ho, hi), lambda i: (0, 0)),         # Wy (resident)
                pl.BlockSpec((wi, wo), lambda i: (0, 0)),         # Wx^T (resident)
                pl.BlockSpec((tc, hi, wi), lambda i: (i, 0, 0)),  # TC planes in
            ],
            out_specs=pl.BlockSpec((tc, ho, wo), lambda i: (i, 0, 0)),
        ),
        compiler_params=pltpu.CompilerParams(
            dimension_semantics=("parallel",),
            vmem_limit_bytes=48 * 1024 * 1024,
        ),
    )(wy, wxt, x_flat)

    return out_flat.reshape(n, c, ho, wo)


if __name__ == "__main__":
    key = jax.random.PRNGKey(0)
    N, C, H, W = 2, 4, 16, 16
    x = jax.random.normal(key, (N, C, H, W), dtype=jnp.float32)

    out = interpolate_bilinear(x, scale_factor=2.0)
    out = jax.block_until_ready(out)
    assert out.shape == (N, C, 2 * H, 2 * W), out.shape

    # Sanity check against the same separable formulation in plain JAX.
    wy = _bilinear_matrix(H, 2.0)
    wx = _bilinear_matrix(W, 2.0)
    ref = jnp.einsum("oh,nchw,pw->ncop", wy, x, wx)
    assert jnp.allclose(out, ref, atol=1e-4, rtol=1e-4), float(
        jnp.max(jnp.abs(out - ref)))

    print("KERNEL_OK")
</pallas_src>

<mosaic_0001>
module attributes {stable_mosaic.version = 11 : i64} {
  func.func @_interp_kernel(%arg0: i32, %arg1: memref<32x16xf32, #tpu.memory_space<vmem>>, %arg2: memref<16x32xf32, #tpu.memory_space<vmem>>, %arg3: memref<8x16x16xf32, #tpu.memory_space<vmem>>, %arg4: memref<8x32x32xf32, #tpu.memory_space<vmem>>) attributes {dimension_semantics = [#tpu.dimension_semantics<parallel>], iteration_bounds = array<i64: 1>, scalar_prefetch = 0 : i64, scratch_operands = 0 : i64, tpu.core_type = #tpu.core_type<tc>, window_params = [{pipeline_mode = #tpu.pipeline_mode<synchronous>, transform_indices = @transform_0, window_bounds = array<i64: 32, 16>}, {pipeline_mode = #tpu.pipeline_mode<synchronous>, transform_indices = @transform_1, window_bounds = array<i64: 16, 32>}, {transform_indices = @transform_2, window_bounds = array<i64: 8, 16, 16>}, {transform_indices = @transform_3, window_bounds = array<i64: 8, 32, 32>}]} {
    %c0 = arith.constant 0 : index
    %c0_0 = arith.constant 0 : index
    %c0_1 = arith.constant 0 : index
    %0 = vector.load %arg3[%c0, %c0_0, %c0_1] : memref<8x16x16xf32, #tpu.memory_space<vmem>>, vector<8x16x16xf32>
    %c0_2 = arith.constant 0 : index
    %c0_3 = arith.constant 0 : index
    %1 = vector.load %arg1[%c0_2, %c0_3] : memref<32x16xf32, #tpu.memory_space<vmem>>, vector<32x16xf32>
    %2 = vector.shape_cast %1 : vector<32x16xf32> to vector<1x32x16xf32>
    %3 = vector.broadcast %2 : vector<1x32x16xf32> to vector<8x32x16xf32>
    "tpu.trace_start"() <{level = 10 : i32, message = "boh,bhw->bow"}> : () -> ()
    %cst = arith.constant dense<0.000000e+00> : vector<8x32x16xf32>
    %4 = tpu.matmul %3, %0, %cst {dimension_numbers = #tpu.dot_dimension_numbers<[2], [1], [1], [2], [0, 0, 0, 1, 1, 2], [0], [0]>} : vector<8x32x16xf32>, vector<8x16x16xf32>, vector<8x32x16xf32> -> vector<8x32x16xf32>
    "tpu.trace_stop"() : () -> ()
    %5 = vector.shape_cast %4 : vector<8x32x16xf32> to vector<256x16xf32>
    %c0_4 = arith.constant 0 : index
    %c0_5 = arith.constant 0 : index
    %6 = vector.load %arg2[%c0_4, %c0_5] : memref<16x32xf32, #tpu.memory_space<vmem>>, vector<16x32xf32>
    %cst_6 = arith.constant dense<0.000000e+00> : vector<256x32xf32>
    %7 = tpu.matmul %5, %6, %cst_6 {dimension_numbers = #tpu.dot_dimension_numbers<[1], [0], [0], [1], [0, 0, 1, 1], [], []>} : vector<256x16xf32>, vector<16x32xf32>, vector<256x32xf32> -> vector<256x32xf32>
    %8 = vector.shape_cast %7 : vector<256x32xf32> to vector<8x32x32xf32>
    %c0_7 = arith.constant 0 : index
    %c0_8 = arith.constant 0 : index
    %c0_9 = arith.constant 0 : index
    %9 = vector.load %arg4[%c0_7, %c0_8, %c0_9] : memref<8x32x32xf32, #tpu.memory_space<vmem>>, vector<8x32x32xf32>
    tpu.vector_store %arg4[%c0_7, %c0_8, %c0_9], %8 {strides = array<i32>} : memref<8x32x32xf32, #tpu.memory_space<vmem>>, vector<8x32x32xf32>,
    return
  }
  func.func @transform_0(%arg0: i32) -> (i32, i32) {
    %c0_i32 = arith.constant 0 : i32
    %c0_i32_0 = arith.constant 0 : i32
    %c0_i32_1 = arith.constant 0 : i32
    return %c0_i32, %c0_i32_0 : i32, i32
  }
  func.func @transform_1(%arg0: i32) -> (i32, i32) {
    %c0_i32 = arith.constant 0 : i32
    %c0_i32_0 = arith.constant 0 : i32
    %c0_i32_1 = arith.constant 0 : i32
    return %c0_i32, %c0_i32_0 : i32, i32
  }
  func.func @transform_2(%arg0: i32) -> (i32, i32, i32) {
    %c0_i32 = arith.constant 0 : i32
    %c0_i32_0 = arith.constant 0 : i32
    %c0_i32_1 = arith.constant 0 : i32
    return %arg0, %c0_i32, %c0_i32_0 : i32, i32, i32
  }
  func.func @transform_3(%arg0: i32) -> (i32, i32, i32) {
    %c0_i32 = arith.constant 0 : i32
    %c0_i32_0 = arith.constant 0 : i32
    %c0_i32_1 = arith.constant 0 : i32
    return %arg0, %c0_i32, %c0_i32_0 : i32, i32, i32
  }
}

</mosaic_0001>

<bundles_post_ra>
// kernel: interpolate_bilinear.1
= control target key start
LH: loop header
LB: loop body
LE: loop exit
PB: predicated region body
PF: predicated region fallthrough
CT: control target
= control target key end

     0   :  { %vm35_vm0 = vcmask 130048   ;;  %s829_s0 = inlined_call_operand.vmem [shape: f32[32,16], index: 0, kind: input, shape index: {}]   ;;  %s830_s1 = inlined_call_operand.vmem [shape: f32[16,32], index: 1, kind: input, shape index: {}]   ;;  %s831_s2 = inlined_call_operand.vmem [shape: f32[8,16,16], index: 2, kind: input, shape index: {}]   ;;  %s832_s3 = inlined_call_operand.hbm [shape: f32[8,32,32], index: 3, kind: output, shape index: {}]  }
   0x1   :  { %v20_v0 = vld [vmem:[%s831_s2 + $0x28] sm:$0xff]  ;;  %v19_v1 = vld [vmem:[%s831_s2 + $0x20] sm:$0xff]  ;;  %v22_v8 = vld [vmem:[%s831_s2 + $0x38] sm:$0xff] }
   0x2   :  { %120 = vmatpush.msra.mxu2 %v20_v0  ;;  %v31_v2 = vld [vmem:[%s829_s0] sm:$0xff]  ;;  %v16_v3 = vld [vmem:[%s831_s2 + $0x8] sm:$0xff]  ;;  %v21_v10 = vld [vmem:[%s831_s2 + $0x30] sm:$0xff]  ;;  %149 = vmatpush.msra.mxu3 %v22_v8 }
   0x3   :  { %v15_v4 = vld [vmem:[%s831_s2] sm:$0xff]  ;;  %v28_v5 = vld [vmem:[%s831_s2 + $0x68] sm:$0xff]  ;;  %62 = vmatpush.msra.mxu0 %v16_v3  ;;  %v18_v11 = vld [vmem:[%s831_s2 + $0x18] sm:$0xff] }
   0x4   :  { %121 = vmatpush.msra.mxu2 %v19_v1  ;;  %v24_v6 = vld [vmem:[%s831_s2 + $0x48] sm:$0xff]  ;;  %v27_v7 = vld [vmem:[%s831_s2 + $0x60] sm:$0xff]  ;;  %v17_v12 = vld [vmem:[%s831_s2 + $0x10] sm:$0xff] }
   0x5   :  { %550 = vmatmul.msk.f32.vlgmr.msra.gmra.mxu2 %vm35_vm0, %v31_v2  ;;  %63 = vmatpush.msra.mxu0 %v15_v4  ;;  %v23_v9 = vld [vmem:[%s831_s2 + $0x40] sm:$0xff] }
   0x6   :  { %236 = vmatpush.msrb.mxu2 %v28_v5  ;;  %542 = vmatmul.msk.f32.vlgmr.msra.gmra.mxu0 %vm35_vm0, %v31_v2 }
   0x7   :  { %178 = vmatpush.msrb.mxu0 %v24_v6 }
   0x8   :  { %8 = vsyncpa [#allocation3], 0  ;;  %237 = vmatpush.msrb.mxu2 %v27_v7  ;;  %v30_v13 = vld [vmem:[%s831_s2 + $0x78] sm:$0xff]  ;;  %91 = vmatpush.msra.mxu1 %v18_v11  ;;  %v32_v15 = vld [vmem:[%s829_s0 + $0x8] sm:$0xff]  ;;  %vm491_vm1 = vcmask 261120   ;;  %s530_s30 = sshll.u32 %s832_s3, 4  ;;  %s531_s30 = int_to_ptr.hbm [resolvable:$true] %s530_s30 }
   0x9   :  { %179 = vmatpush.msrb.mxu0 %v23_v9  ;;  %150 = vmatpush.msra.mxu3 %v21_v10  ;;  %v26_v14 = vld [vmem:[%s831_s2 + $0x58] sm:$0xff]  ;;  %v33_v16 = vld [vmem:[%s829_s0 + $0x10] sm:$0xff]  ;;  %v281_v20 = vld [vmem:[%s830_s1 + $0x8] sm:$0xff]  ;;  %s642_s4 = smov 128   ;;  %s643_s5 = smov 8  }
   0xa   :  { %554 = vmatmul.msk.f32.vlgmr.msra.gmra.mxu3 %vm35_vm0, %v31_v2  ;;  %92 = vmatpush.msra.mxu1 %v17_v12  ;;  %v29_v17 = vld [vmem:[%s831_s2 + $0x70] sm:$0xff]  ;;  %v34_v19 = vld [vmem:[%s829_s0 + $0x18] sm:$0xff]  ;;  %v280_v21 = vld [vmem:[%s830_s1] sm:$0xff]  ;;  %s641_s1 = smov [#allocation2]  }
   0xb   :  { %265 = vmatpush.msrb.mxu3 %v30_v13  ;;  %546 = vmatmul.msk.f32.vlgmr.msra.gmra.mxu1 %vm35_vm0, %v31_v2  ;;  %v25_v18 = vld [vmem:[%s831_s2 + $0x50] sm:$0xff]  ;;  %s528_s27 = sshll.u32 %s641_s1, 4  ;;  %s529_s27 = int_to_ptr.vmem [resolvable:$true] %s528_s27 }
   0xc   :  { %207 = vmatpush.msrb.mxu1 %v26_v14  ;;  %392 = vmatpush.msra.mxu0 %v281_v20 }
   0xd   :  { %551 = vmatmul.msk.f32.gmra.mxu2 %vm35_vm0, %v32_v15  ;;  %266 = vmatpush.msrb.mxu3 %v29_v17 }
   0xe   :  { %543 = vmatmul.msk.f32.gmra.mxu0 %vm35_vm0, %v32_v15  ;;  %208 = vmatpush.msrb.mxu1 %v25_v18 }
   0xf   :  { %608 = vmatpush.msra.mxu3 %v281_v20  ;;  %607 = vmatpush.msra.mxu2 %v281_v20 }
  0x10   :  { %606 = vmatpush.msra.mxu1 %v281_v20  ;;  %393 = vmatpush.msra.mxu0 %v280_v21 }
  0x11   :  { %610 = vmatpush.msra.mxu2 %v280_v21  ;;  %611 = vmatpush.msra.mxu3 %v280_v21 }
  0x12   :  { %555 = vmatmul.msk.f32.gmra.mxu3 %vm35_vm0, %v32_v15  ;;  %609 = vmatpush.msra.mxu1 %v280_v21 }
  0x13   :  { %547 = vmatmul.msk.f32.gmra.mxu1 %vm35_vm0, %v32_v15 }
  0x15   :  { %552 = vmatmul.msk.f32.gmra.mxu2 %vm35_vm0, %v33_v16 }
  0x16   :  { %544 = vmatmul.msk.f32.gmra.mxu0 %vm35_vm0, %v33_v16 }
  0x1a   :  { %556 = vmatmul.msk.f32.gmra.mxu3 %vm35_vm0, %v33_v16 }
  0x1b   :  { %548 = vmatmul.msk.f32.gmra.mxu1 %vm35_vm0, %v33_v16 }
  0x1d   :  { %553 = vmatmul.msk.f32.gmra.mxu2 %vm35_vm0, %v34_v19 }
  0x1e   :  { %545 = vmatmul.msk.f32.gmra.mxu0 %vm35_vm0, %v34_v19 }
  0x22   :  { %557 = vmatmul.msk.f32.gmra.mxu3 %vm35_vm0, %v34_v19 }
  0x23   :  { %549 = vmatmul.msk.f32.gmra.mxu1 %vm35_vm0, %v34_v19 }
  0x25   :  { %566 = vmatmul.msk.f32.vlgmr.msrb.gmra.mxu2 %vm35_vm0, %v31_v2 }
  0x26   :  { %558 = vmatmul.msk.f32.vlgmr.msrb.gmra.mxu0 %vm35_vm0, %v31_v2 }
  0x2a   :  { %570 = vmatmul.msk.f32.vlgmr.msrb.gmra.mxu3 %vm35_vm0, %v31_v2 }
  0x2b   :  { %562 = vmatmul.msk.f32.vlgmr.msrb.gmra.mxu1 %vm35_vm0, %v31_v2 }
  0x2d   :  { %567 = vmatmul.msk.f32.gmra.mxu2 %vm35_vm0, %v32_v15 }
  0x2e   :  { %559 = vmatmul.msk.f32.gmra.mxu0 %vm35_vm0, %v32_v15 }
  0x32   :  { %571 = vmatmul.msk.f32.gmra.mxu3 %vm35_vm0, %v32_v15 }
  0x33   :  { %563 = vmatmul.msk.f32.gmra.mxu1 %vm35_vm0, %v32_v15 }
  0x35   :  { %568 = vmatmul.msk.f32.gmra.mxu2 %vm35_vm0, %v33_v16 }
  0x36   :  { %560 = vmatmul.msk.f32.gmra.mxu0 %vm35_vm0, %v33_v16 }
  0x3a   :  { %572 = vmatmul.msk.f32.gmra.mxu3 %vm35_vm0, %v33_v16 }
  0x3b   :  { %564 = vmatmul.msk.f32.gmra.mxu1 %vm35_vm0, %v33_v16 }
  0x3d   :  { %569 = vmatmul.msk.f32.gmra.mxu2 %vm35_vm0, %v34_v19 }
  0x3e   :  { %561 = vmatmul.msk.f32.gmra.mxu0 %vm35_vm0, %v34_v19 }
  0x42   :  { %573 = vmatmul.msk.f32.gmra.mxu3 %vm35_vm0, %v34_v19 }
  0x43   :  { %565 = vmatmul.msk.f32.gmra.mxu1 %vm35_vm0, %v34_v19 }
  0x83   :  { %v65_v22 = vpop.f32.mrf.mxu0 }
  0x84   :  { %574 = vmatmul.msk.f32.vlgmr.msra.gmra.mxu0 %vm35_vm0, %v65_v22 }
  0x88   :  { %v123_v23 = vpop.f32.mrf.mxu2  ;;  %v94_v27 = vpop.f32.mrf.mxu1 }
  0x89   :  { %582 = vmatmul.msk.f32.vlgmr.msra.gmra.mxu1 %vm35_vm0, %v123_v23 }
  0x8b   :  { %v68_v24 = vpop.f32.mrf.mxu0 }
  0x8c   :  { %575 = vmatmul.msk.f32.gmra.mxu0 %vm35_vm0, %v68_v24 }
  0x8d   :  { %v152_v29 = vpop.f32.mrf.mxu3 }
  0x90   :  { %v126_v25 = vpop.f32.mrf.mxu2  ;;  %v97_v31 = vpop.f32.mrf.mxu1 }
  0x91   :  { %583 = vmatmul.msk.f32.gmra.mxu1 %vm35_vm0, %v126_v25 }
  0x93   :  { %v71_v26 = vpop.f32.mrf.mxu0 }
  0x94   :  { %576 = vmatmul.msk.f32.gmra.mxu0 %vm35_vm0, %v71_v26 }
  0x95   :  { %v155_v33 = vpop.f32.mrf.mxu3 }
  0x98   :  { %v129_v28 = vpop.f32.mrf.mxu2  ;;  %v100_v35 = vpop.f32.mrf.mxu1 }
  0x99   :  { %584 = vmatmul.msk.f32.gmra.mxu1 %vm35_vm0, %v129_v28 }
  0x9b   :  { %v74_v30 = vpop.f32.mrf.mxu0 }
  0x9c   :  { %577 = vmatmul.msk.f32.gmra.mxu0 %vm35_vm0, %v74_v30 }
  0x9d   :  { %v158_v38 = vpop.f32.mrf.mxu3 }
  0xa0   :  { %v132_v32 = vpop.f32.mrf.mxu2  ;;  %v103_v40 = vpop.f32.mrf.mxu1 }
  0xa1   :  { %585 = vmatmul.msk.f32.gmra.mxu1 %vm35_vm0, %v132_v32 }
  0xa3   :  { %v181_v34 = vpop.f32.mrf.mxu0 }
  0xa4   :  { %578 = vmatmul.msk.f32.gmra.mxu0 %vm35_vm0, %v94_v27  ;;  %590 = vmatmul.msk.f32.vlgmr.msra.gmra.mxu2 %vm35_vm0, %v181_v34 }
  0xa5   :  { %v161_v42 = vpop.f32.mrf.mxu3 }
  0xa8   :  { %v239_v36 = vpop.f32.mrf.mxu2  ;;  %v210_v45 = vpop.f32.mrf.mxu1 }
  0xa9   :  { %586 = vmatmul.msk.f32.gmra.mxu1 %vm35_vm0, %v152_v29  ;;  %598 = vmatmul.msk.f32.vlgmr.msra.gmra.mxu3 %vm35_vm0, %v239_v36 }
  0xab   :  { %v184_v37 = vpop.f32.mrf.mxu0 }
  0xac   :  { %579 = vmatmul.msk.f32.gmra.mxu0 %vm35_vm0, %v97_v31  ;;  %591 = vmatmul.msk.f32.gmra.mxu2 %vm35_vm0, %v184_v37 }
  0xad   :  { %v268_v47 = vpop.f32.mrf.mxu3 }
  0xb0   :  { %v242_v39 = vpop.f32.mrf.mxu2  ;;  %v213_v48 = vpop.f32.mrf.mxu1 }
  0xb1   :  { %587 = vmatmul.msk.f32.gmra.mxu1 %vm35_vm0, %v155_v33  ;;  %599 = vmatmul.msk.f32.gmra.mxu3 %vm35_vm0, %v242_v39 }
  0xb3   :  { %v187_v41 = vpop.f32.mrf.mxu0 }
  0xb4   :  { %580 = vmatmul.msk.f32.gmra.mxu0 %vm35_vm0, %v100_v35  ;;  %592 = vmatmul.msk.f32.gmra.mxu2 %vm35_vm0, %v187_v41 }
  0xb5   :  { %v271_v49 = vpop.f32.mrf.mxu3 }
  0xb8   :  { %v245_v43 = vpop.f32.mrf.mxu2  ;;  %v216_v50 = vpop.f32.mrf.mxu1 }
  0xb9   :  { %588 = vmatmul.msk.f32.gmra.mxu1 %vm35_vm0, %v158_v38  ;;  %600 = vmatmul.msk.f32.gmra.mxu3 %vm35_vm0, %v245_v43 }
  0xbb   :  { %v190_v44 = vpop.f32.mrf.mxu0 }
  0xbc   :  { %581 = vmatmul.msk.f32.gmra.mxu0 %vm35_vm0, %v103_v40  ;;  %593 = vmatmul.msk.f32.gmra.mxu2 %vm35_vm0, %v190_v44 }
  0xbd   :  { %v274_v51 = vpop.f32.mrf.mxu3 }
  0xc0   :  { %v248_v46 = vpop.f32.mrf.mxu2  ;;  %v219_v52 = vpop.f32.mrf.mxu1 }
  0xc1   :  { %589 = vmatmul.msk.f32.gmra.mxu1 %vm35_vm0, %v161_v42  ;;  %601 = vmatmul.msk.f32.gmra.mxu3 %vm35_vm0, %v248_v46 }
  0xc4   :  { %594 = vmatmul.msk.f32.gmra.mxu2 %vm35_vm0, %v210_v45 }
  0xc5   :  { %v277_v53 = vpop.f32.mrf.mxu3 }
  0xc9   :  { %602 = vmatmul.msk.f32.gmra.mxu3 %vm35_vm0, %v268_v47 }
  0xcc   :  { %595 = vmatmul.msk.f32.gmra.mxu2 %vm35_vm0, %v213_v48 }
  0xd1   :  { %603 = vmatmul.msk.f32.gmra.mxu3 %vm35_vm0, %v271_v49 }
  0xd4   :  { %596 = vmatmul.msk.f32.gmra.mxu2 %vm35_vm0, %v216_v50 }
  0xd9   :  { %604 = vmatmul.msk.f32.gmra.mxu3 %vm35_vm0, %v274_v51 }
  0xdc   :  { %597 = vmatmul.msk.f32.gmra.mxu2 %vm35_vm0, %v219_v52 }
  0xe1   :  { %605 = vmatmul.msk.f32.gmra.mxu3 %vm35_vm0, %v277_v53 }
 0x101   :  { %v395_v54 = vpop.f32.mrf.mxu0 }
 0x102   :  { %492 = vst.msk [vmem:[#allocation2] sm:$0xff] %vm491_vm1, %v395_v54 }
 0x106   :  { %v419_v55 = vpop.f32.mrf.mxu1 }
 0x107   :  { %500 = vst.msk [vmem:[#allocation2 + $0x40] sm:$0xff] %vm491_vm1, %v419_v55 }
 0x109   :  { %v398_v56 = vpop.f32.mrf.mxu0 }
 0x10a   :  { %493 = vst.msk [vmem:[#allocation2 + $0x8] sm:$0xff] %vm491_vm1, %v398_v56 }
 0x10e   :  { %v422_v57 = vpop.f32.mrf.mxu1 }
 0x10f   :  { %501 = vst.msk [vmem:[#allocation2 + $0x48] sm:$0xff] %vm491_vm1, %v422_v57 }
 0x111   :  { %v401_v58 = vpop.f32.mrf.mxu0 }
 0x112   :  { %494 = vst.msk [vmem:[#allocation2 + $0x10] sm:$0xff] %vm491_vm1, %v401_v58 }
 0x116   :  { %v425_v59 = vpop.f32.mrf.mxu1 }
 0x117   :  { %502 = vst.msk [vmem:[#allocation2 + $0x50] sm:$0xff] %vm491_vm1, %v425_v59 }
 0x119   :  { %v404_v60 = vpop.f32.mrf.mxu0 }
 0x11a   :  { %495 = vst.msk [vmem:[#allocation2 + $0x18] sm:$0xff] %vm491_vm1, %v404_v60 }
 0x11e   :  { %v428_v61 = vpop.f32.mrf.mxu1 }
 0x11f   :  { %503 = vst.msk [vmem:[#allocation2 + $0x58] sm:$0xff] %vm491_vm1, %v428_v61 }
 0x121   :  { %v407_v62 = vpop.f32.mrf.mxu0 }
 0x122   :  { %496 = vst.msk [vmem:[#allocation2 + $0x20] sm:$0xff] %vm491_vm1, %v407_v62 }
 0x126   :  { %v431_v63 = vpop.f32.mrf.mxu1 }
 0x127   :  { %504 = vst.msk [vmem:[#allocation2 + $0x60] sm:$0xff] %vm491_vm1, %v431_v63  ;;  %v443_v0 = vpop.f32.mrf.mxu2 }
 0x128   :  { %508 = vst.msk [vmem:[#allocation2 + $0x80] sm:$0xff] %vm491_vm1, %v443_v0 }
 0x129   :  { %v410_v1 = vpop.f32.mrf.mxu0 }
 0x12a   :  { %497 = vst.msk [vmem:[#allocation2 + $0x28] sm:$0xff] %vm491_vm1, %v410_v1 }
 0x12c   :  { %v467_v2 = vpop.f32.mrf.mxu3 }
 0x12d   :  { %516 = vst.msk [vmem:[#allocation2 + $0xc0] sm:$0xff] %vm491_vm1, %v467_v2 }
 0x12e   :  { %v434_v3 = vpop.f32.mrf.mxu1 }
 0x12f   :  { %505 = vst.msk [vmem:[#allocation2 + $0x68] sm:$0xff] %vm491_vm1, %v434_v3  ;;  %v446_v4 = vpop.f32.mrf.mxu2 }
 0x130   :  { %509 = vst.msk [vmem:[#allocation2 + $0x88] sm:$0xff] %vm491_vm1, %v446_v4 }
 0x131   :  { %v413_v5 = vpop.f32.mrf.mxu0 }
 0x132   :  { %498 = vst.msk [vmem:[#allocation2 + $0x30] sm:$0xff] %vm491_vm1, %v413_v5 }
 0x134   :  { %v470_v6 = vpop.f32.mrf.mxu3 }
 0x135   :  { %517 = vst.msk [vmem:[#allocation2 + $0xc8] sm:$0xff] %vm491_vm1, %v470_v6 }
 0x136   :  { %v437_v7 = vpop.f32.mrf.mxu1 }
 0x137   :  { %506 = vst.msk [vmem:[#allocation2 + $0x70] sm:$0xff] %vm491_vm1, %v437_v7  ;;  %v449_v8 = vpop.f32.mrf.mxu2 }
 0x138   :  { %510 = vst.msk [vmem:[#allocation2 + $0x90] sm:$0xff] %vm491_vm1, %v449_v8 }
 0x139   :  { %v416_v9 = vpop.f32.mrf.mxu0 }
 0x13a   :  { %499 = vst.msk [vmem:[#allocation2 + $0x38] sm:$0xff] %vm491_vm1, %v416_v9 }
 0x13c   :  { %v473_v10 = vpop.f32.mrf.mxu3 }
 0x13d   :  { %518 = vst.msk [vmem:[#allocation2 + $0xd0] sm:$0xff] %vm491_vm1, %v473_v10 }
 0x13e   :  { %v440_v11 = vpop.f32.mrf.mxu1 }
 0x13f   :  { %507 = vst.msk [vmem:[#allocation2 + $0x78] sm:$0xff] %vm491_vm1, %v440_v11  ;;  %v452_v12 = vpop.f32.mrf.mxu2 }
 0x140   :  { %511 = vst.msk [vmem:[#allocation2 + $0x98] sm:$0xff] %vm491_vm1, %v452_v12 }
 0x144   :  { %v476_v13 = vpop.f32.mrf.mxu3 }
 0x145   :  { %519 = vst.msk [vmem:[#allocation2 + $0xd8] sm:$0xff] %vm491_vm1, %v476_v13 }
 0x147   :  { %v455_v14 = vpop.f32.mrf.mxu2 }
 0x148   :  { %512 = vst.msk [vmem:[#allocation2 + $0xa0] sm:$0xff] %vm491_vm1, %v455_v14 }
 0x14c   :  { %v479_v15 = vpop.f32.mrf.mxu3 }
 0x14d   :  { %520 = vst.msk [vmem:[#allocation2 + $0xe0] sm:$0xff] %vm491_vm1, %v479_v15 }
 0x14f   :  { %v458_v16 = vpop.f32.mrf.mxu2 }
 0x150   :  { %513 = vst.msk [vmem:[#allocation2 + $0xa8] sm:$0xff] %vm491_vm1, %v458_v16 }
 0x154   :  { %v482_v17 = vpop.f32.mrf.mxu3 }
 0x155   :  { %521 = vst.msk [vmem:[#allocation2 + $0xe8] sm:$0xff] %vm491_vm1, %v482_v17 }
 0x157   :  { %v461_v18 = vpop.f32.mrf.mxu2 }
 0x158   :  { %514 = vst.msk [vmem:[#allocation2 + $0xb0] sm:$0xff] %vm491_vm1, %v461_v18 }
 0x15c   :  { %v485_v19 = vpop.f32.mrf.mxu3 }
 0x15d   :  { %522 = vst.msk [vmem:[#allocation2 + $0xf0] sm:$0xff] %vm491_vm1, %v485_v19 }
 0x15f   :  { %v464_v20 = vpop.f32.mrf.mxu2 }
 0x160   :  { %515 = vst.msk [vmem:[#allocation2 + $0xb8] sm:$0xff] %vm491_vm1, %v464_v20 }
 0x164   :  { %v488_v21 = vpop.f32.mrf.mxu3 }
 0x165   :  { %523 = vst.msk [vmem:[#allocation2 + $0xf8] sm:$0xff] %vm491_vm1, %v488_v21 }
 0x166   :  { %536 = dma.vmem_to_hbm [thread:$0]  %s529_s27, 4096, %s531_s30, [#allocation3], %s642_s4, %s642_s4, %s643_s5  }
 0x167   :  { %639 = dma.done.wait [#allocation3], 4096  }
 0x168   :  { %640 = vsyncadd [#allocation3], 4294963200 }
 0x169   :  { %541 = vsyncpa [#allocation3], 1 }

</bundles_post_ra>
